<compile_context>
chip_gen: v7x
topology: tpu7x:2x2x1
jax: 0.10.0
libtpu: 0.0.40
codegen_flags: <defaults>
</compile_context>

<pallas_src>
import functools

import jax
import jax.numpy as jnp
from jax.experimental import pallas as pl
from jax.experimental.pallas import tpu as pltpu


def arm_bn_kernel(x_ref, wt_ref, cb_ref, g_ref, bb_ref, mu_ref, var_ref,
                  o_ref, att_ref, *, eps):
    # x_ref  : (1, C, HW)  one batch element, native dtype
    # wt_ref : (C, C)      transposed 1x1-conv weight (y @ wt == W @ y)
    # cb_ref : (1, C)      conv bias
    # g_ref, bb_ref, mu_ref, var_ref : (1, C) BatchNorm2d gamma/beta/mean/var
    # o_ref  : (1, C, HW)  x * attention
    # att_ref: (1, 1, C)   attention gate (sigmoid output)
    x = x_ref[0]                                   # (C, HW), keep native dtype
    c, hw = x.shape

    # ---- AdaptiveAvgPool2d((1,1)): spatial mean with f32 accumulation -------
    n_chunks = hw // 128
    if hw % 128 == 0 and 1 < n_chunks <= 64:
        # Per-lane partial sums on the VPU (128-lane, vreg-aligned chunks),
        # single cross-lane reduce at the end.
        acc = x[:, 0:128].astype(jnp.float32)                     # (C, 128)
        for k in range(1, n_chunks):
            acc = acc + x[:, k * 128:(k + 1) * 128].astype(jnp.float32)
        y = jnp.sum(acc, axis=-1, dtype=jnp.float32)              # (C,)
    else:
        y = jnp.sum(x, axis=-1, dtype=jnp.float32)                # (C,)
    y = (y * (1.0 / hw)).reshape(1, c)                            # (1, C) f32

    # ---- Conv2d 1x1 (C -> C) with bias: y @ W^T + b --------------------------
    z = jnp.dot(y, wt_ref[...], preferred_element_type=jnp.float32)
    z = z + cb_ref[...].astype(jnp.float32)                       # (1, C)

    # ---- BatchNorm2d (eval mode, running statistics) --------------------------
    inv_std = 1.0 / jnp.sqrt(var_ref[...].astype(jnp.float32) + eps)
    z = (z - mu_ref[...].astype(jnp.float32)) * inv_std
    z = z * g_ref[...].astype(jnp.float32) + bb_ref[...].astype(jnp.float32)

    # ---- Sigmoid gate + per-channel rescale (native dtype on the big block) --
    s = jax.nn.sigmoid(z)                                         # (1, C) f32
    att_ref[0] = s.astype(att_ref.dtype)                          # (1, C)
    o_ref[0] = x * s[0].astype(x.dtype)[:, None]                  # (C, HW)


def arm_bn(x_nchw, conv_w, conv_b, bn_gamma, bn_beta, bn_mean, bn_var,
           eps=1e-5, attention_single=False):
    """Fused ARM_bn forward.

    x_nchw : (B, C, H, W)
    conv_w : (C, C)  squeezed 1x1 conv weight (PyTorch conv.weight[:, :, 0, 0])
    conv_b : (C,)    conv bias
    bn_*   : (C,)    BatchNorm2d weight / bias / running_mean / running_var
    """
    b, c, h, w = x_nchw.shape
    hw = h * w
    x_flat = x_nchw.reshape(b, c, hw)

    wt = jnp.transpose(conv_w)            # (C, C): y @ wt  ==  conv1x1(y)
    row = lambda v: v.reshape(1, c)

    itemsize = jnp.dtype(x_nchw.dtype).itemsize
    block_bytes = c * hw * itemsize
    # Double-buffered input + output slabs, resident weights, f32 temporaries.
    vmem_need = 4 * block_bytes + (c * c + 6 * c) * 4 + 2 * c * 128 * 4
    # Stay within the v7x 64-MiB physical budget; for very large feature maps
    # this kernel should be split into a pool+excite pass and an HW-tiled
    # scale pass instead of growing the block further.
    vmem_limit = int(min(64 * 1024 * 1024,
                         max(32 * 1024 * 1024, 2 * vmem_need)))

    cost = pl.CostEstimate(
        flops=b * (2 * c * hw + 2 * c * c + 8 * c),     # pool + rescale + conv
        transcendentals=b * 2 * c,                      # sigmoid + inv_std
        bytes_accessed=2 * b * c * hw * itemsize + (c * c + 6 * c) * 4,
    )

    out_flat, att = pl.pallas_call(
        functools.partial(arm_bn_kernel, eps=eps),
        grid=(b,),
        in_specs=[
            pl.BlockSpec((1, c, hw), lambda i: (i, 0, 0)),   # x: one batch/step
            pl.BlockSpec((c, c), lambda i: (0, 0)),          # conv weight (resident)
            pl.BlockSpec((1, c), lambda i: (0, 0)),          # conv bias
            pl.BlockSpec((1, c), lambda i: (0, 0)),          # bn gamma
            pl.BlockSpec((1, c), lambda i: (0, 0)),          # bn beta
            pl.BlockSpec((1, c), lambda i: (0, 0)),          # bn running_mean
            pl.BlockSpec((1, c), lambda i: (0, 0)),          # bn running_var
        ],
        out_specs=[
            pl.BlockSpec((1, c, hw), lambda i: (i, 0, 0)),   # out
            pl.BlockSpec((1, 1, c), lambda i: (i, 0, 0)),    # attention gate
        ],
        out_shape=[
            jax.ShapeDtypeStruct((b, c, hw), x_nchw.dtype),
            jax.ShapeDtypeStruct((b, 1, c), x_nchw.dtype),
        ],
        compiler_params=pltpu.CompilerParams(
            dimension_semantics=("parallel",),               # dual-TC on v7x
            vmem_limit_bytes=vmem_limit,
        ),
        cost_estimate=cost,
    )(x_flat, wt, row(conv_b), row(bn_gamma), row(bn_beta),
      row(bn_mean), row(bn_var))

    out = out_flat.reshape(b, c, h, w)
    if attention_single:
        return out, att.reshape(b, c, 1, 1)
    return out


if __name__ == "__main__":
    key = jax.random.PRNGKey(0)
    ks = jax.random.split(key, 7)

    # Small shapes consistent with the module; HW = 256 is a 128-multiple so
    # the output stores are lane-dense (unmasked).
    B, C, H, W = 2, 32, 16, 16
    eps = 1e-5

    x = jax.random.normal(ks[0], (B, C, H, W), dtype=jnp.float32)
    conv_w = jax.random.normal(ks[1], (C, C), dtype=jnp.float32) * 0.1
    conv_b = jax.random.normal(ks[2], (C,), dtype=jnp.float32) * 0.1
    bn_gamma = 1.0 + 0.1 * jax.random.normal(ks[3], (C,), dtype=jnp.float32)
    bn_beta = 0.1 * jax.random.normal(ks[4], (C,), dtype=jnp.float32)
    bn_mean = 0.1 * jax.random.normal(ks[5], (C,), dtype=jnp.float32)
    bn_var = jnp.abs(jax.random.normal(ks[6], (C,), dtype=jnp.float32)) + 0.5

    out, att = arm_bn(x, conv_w, conv_b, bn_gamma, bn_beta, bn_mean, bn_var,
                      eps=eps, attention_single=True)
    out = jax.block_until_ready(out)
    att = jax.block_until_ready(att)

    # Pure-JAX reference of the PyTorch forward (eval-mode BatchNorm).
    y_ref = jnp.mean(x, axis=(2, 3))                           # (B, C)
    z_ref = y_ref @ conv_w.T + conv_b                          # 1x1 conv
    z_ref = (z_ref - bn_mean) / jnp.sqrt(bn_var + eps) * bn_gamma + bn_beta
    s_ref = jax.nn.sigmoid(z_ref)                              # (B, C)
    ref = x * s_ref[:, :, None, None]

    assert out.shape == x.shape
    assert att.shape == (B, C, 1, 1)
    assert jnp.allclose(out, ref, atol=1e-5, rtol=1e-5), "output mismatch vs reference"
    assert jnp.allclose(att[:, :, 0, 0], s_ref, atol=1e-5, rtol=1e-5), "attention mismatch"

    print("KERNEL_OK")
</pallas_src>

<mosaic_0001>
module attributes {stable_mosaic.version = 11 : i64} {
  func.func @arm_bn_kernel(%arg0: i32, %arg1: memref<1x32x256xf32, #tpu.memory_space<vmem>>, %arg2: memref<32x32xf32, #tpu.memory_space<vmem>>, %arg3: memref<1x32xf32, #tpu.memory_space<vmem>>, %arg4: memref<1x32xf32, #tpu.memory_space<vmem>>, %arg5: memref<1x32xf32, #tpu.memory_space<vmem>>, %arg6: memref<1x32xf32, #tpu.memory_space<vmem>>, %arg7: memref<1x32xf32, #tpu.memory_space<vmem>>, %arg8: memref<1x32x256xf32, #tpu.memory_space<vmem>>, %arg9: memref<1x1x32xf32, #tpu.memory_space<vmem>>) attributes {dimension_semantics = [#tpu.dimension_semantics<parallel>], iteration_bounds = array<i64: 2>, scalar_prefetch = 0 : i64, scratch_operands = 0 : i64, tpu.core_type = #tpu.core_type<tc>, window_params = [{transform_indices = @transform_0, window_bounds = array<i64: 1, 32, 256>}, {pipeline_mode = #tpu.pipeline_mode<synchronous>, transform_indices = @transform_1, window_bounds = array<i64: 32, 32>}, {pipeline_mode = #tpu.pipeline_mode<synchronous>, transform_indices = @transform_2, window_bounds = array<i64: 1, 32>}, {pipeline_mode = #tpu.pipeline_mode<synchronous>, transform_indices = @transform_3, window_bounds = array<i64: 1, 32>}, {pipeline_mode = #tpu.pipeline_mode<synchronous>, transform_indices = @transform_4, window_bounds = array<i64: 1, 32>}, {pipeline_mode = #tpu.pipeline_mode<synchronous>, transform_indices = @transform_5, window_bounds = array<i64: 1, 32>}, {pipeline_mode = #tpu.pipeline_mode<synchronous>, transform_indices = @transform_6, window_bounds = array<i64: 1, 32>}, {transform_indices = @transform_7, window_bounds = array<i64: 1, 32, 256>}, {transform_indices = @transform_8, window_bounds = array<i64: 1, 1, 32>}]} {
    %c0 = arith.constant 0 : index
    %c0_0 = arith.constant 0 : index
    %c0_1 = arith.constant 0 : index
    %0 = vector.load %arg1[%c0, %c0_0, %c0_1] : memref<1x32x256xf32, #tpu.memory_space<vmem>>, vector<1x32x256xf32>
    %1 = vector.shape_cast %0 : vector<1x32x256xf32> to vector<32x256xf32>
    %2 = vector.extract_strided_slice %1 {offsets = [0, 0], sizes = [32, 128], strides = [1, 1]} : vector<32x256xf32> to vector<32x128xf32>
    %3 = vector.extract_strided_slice %1 {offsets = [0, 128], sizes = [32, 128], strides = [1, 1]} : vector<32x256xf32> to vector<32x128xf32>
    %4 = arith.addf %2, %3 : vector<32x128xf32>
    %cst = arith.constant dense<0.000000e+00> : vector<32xf32>
    %5 = vector.multi_reduction <add>, %4, %cst [1] : vector<32x128xf32> to vector<32xf32>
    %cst_2 = arith.constant 3.906250e-03 : f32
    %6 = vector.broadcast %cst_2 : f32 to vector<32xf32>
    %7 = arith.mulf %5, %6 : vector<32xf32>
    %8 = vector.shape_cast %7 : vector<32xf32> to vector<1x32xf32>
    %c0_3 = arith.constant 0 : index
    %c0_4 = arith.constant 0 : index
    %9 = vector.load %arg2[%c0_3, %c0_4] : memref<32x32xf32, #tpu.memory_space<vmem>>, vector<32x32xf32>
    %cst_5 = arith.constant dense<0.000000e+00> : vector<1x32xf32>
    %10 = tpu.matmul %8, %9, %cst_5 {dimension_numbers = #tpu.dot_dimension_numbers<[1], [0], [0], [1], [0, 0, 1, 1], [], []>} : vector<1x32xf32>, vector<32x32xf32>, vector<1x32xf32> -> vector<1x32xf32>
    %c0_6 = arith.constant 0 : index
    %c0_7 = arith.constant 0 : index
    %11 = vector.load %arg3[%c0_6, %c0_7] : memref<1x32xf32, #tpu.memory_space<vmem>>, vector<1x32xf32>
    %12 = arith.addf %10, %11 : vector<1x32xf32>
    %c0_8 = arith.constant 0 : index
    %c0_9 = arith.constant 0 : index
    %13 = vector.load %arg7[%c0_8, %c0_9] : memref<1x32xf32, #tpu.memory_space<vmem>>, vector<1x32xf32>
    %cst_10 = arith.constant 9.99999974E-6 : f32
    %14 = vector.broadcast %cst_10 : f32 to vector<1x32xf32>
    %15 = arith.addf %13, %14 : vector<1x32xf32>
    %16 = math.sqrt %15 : vector<1x32xf32>
    %cst_11 = arith.constant 1.000000e+00 : f32
    %17 = vector.broadcast %cst_11 : f32 to vector<1x32xf32>
    %18 = arith.divf %17, %16 : vector<1x32xf32>
    %c0_12 = arith.constant 0 : index
    %c0_13 = arith.constant 0 : index
    %19 = vector.load %arg6[%c0_12, %c0_13] : memref<1x32xf32, #tpu.memory_space<vmem>>, vector<1x32xf32>
    %20 = arith.subf %12, %19 : vector<1x32xf32>
    %21 = arith.mulf %20, %18 : vector<1x32xf32>
    %c0_14 = arith.constant 0 : index
    %c0_15 = arith.constant 0 : index
    %22 = vector.load %arg4[%c0_14, %c0_15] : memref<1x32xf32, #tpu.memory_space<vmem>>, vector<1x32xf32>
    %23 = arith.mulf %21, %22 : vector<1x32xf32>
    %c0_16 = arith.constant 0 : index
    %c0_17 = arith.constant 0 : index
    %24 = vector.load %arg5[%c0_16, %c0_17] : memref<1x32xf32, #tpu.memory_space<vmem>>, vector<1x32xf32>
    %25 = arith.addf %23, %24 : vector<1x32xf32>
    %26 = arith.negf %25 : vector<1x32xf32>
    %27 = math.exp %26 : vector<1x32xf32>
    %cst_18 = arith.constant 1.000000e+00 : f32
    %28 = vector.broadcast %cst_18 : f32 to vector<1x32xf32>
    %29 = arith.addf %28, %27 : vector<1x32xf32>
    %30 = arith.divf %28, %29 : vector<1x32xf32>
    %c0_19 = arith.constant 0 : index
    %c0_20 = arith.constant 0 : index
    %c0_21 = arith.constant 0 : index
    %31 = vector.load %arg9[%c0_19, %c0_20, %c0_21] : memref<1x1x32xf32, #tpu.memory_space<vmem>>, vector<1x1x32xf32>
    %32 = vector.shape_cast %31 : vector<1x1x32xf32> to vector<1x32xf32>
    %33 = vector.shape_cast %30 : vector<1x32xf32> to vector<1x1x32xf32>
    tpu.vector_store %arg9[%c0_19, %c0_20, %c0_21], %33 {strides = array<i32>} : memref<1x1x32xf32, #tpu.memory_space<vmem>>, vector<1x1x32xf32>,
    %34 = vector.shape_cast %30 : vector<1x32xf32> to vector<32xf32>
    %35 = vector.shape_cast %34 : vector<32xf32> to vector<32x1xf32>
    %36 = vector.broadcast %35 : vector<32x1xf32> to vector<32x256xf32>
    %37 = arith.mulf %1, %36 : vector<32x256xf32>
    %c0_22 = arith.constant 0 : index
    %c0_23 = arith.constant 0 : index
    %c0_24 = arith.constant 0 : index
    %38 = vector.load %arg8[%c0_22, %c0_23, %c0_24] : memref<1x32x256xf32, #tpu.memory_space<vmem>>, vector<1x32x256xf32>
    %39 = vector.shape_cast %38 : vector<1x32x256xf32> to vector<32x256xf32>
    %40 = vector.shape_cast %37 : vector<32x256xf32> to vector<1x32x256xf32>
    tpu.vector_store %arg8[%c0_22, %c0_23, %c0_24], %40 {strides = array<i32>} : memref<1x32x256xf32, #tpu.memory_space<vmem>>, vector<1x32x256xf32>,
    return
  }
  func.func @transform_0(%arg0: i32) -> (i32, i32, i32) {
    %c0_i32 = arith.constant 0 : i32
    %c0_i32_0 = arith.constant 0 : i32
    %c0_i32_1 = arith.constant 0 : i32
    return %arg0, %c0_i32, %c0_i32_0 : i32, i32, i32
  }
  func.func @transform_1(%arg0: i32) -> (i32, i32) {
    %c0_i32 = arith.constant 0 : i32
    %c0_i32_0 = arith.constant 0 : i32
    %c0_i32_1 = arith.constant 0 : i32
    return %c0_i32, %c0_i32_0 : i32, i32
  }
  func.func @transform_2(%arg0: i32) -> (i32, i32) {
    %c0_i32 = arith.constant 0 : i32
    %c0_i32_0 = arith.constant 0 : i32
    %c0_i32_1 = arith.constant 0 : i32
    return %c0_i32, %c0_i32_0 : i32, i32
  }
  func.func @transform_3(%arg0: i32) -> (i32, i32) {
    %c0_i32 = arith.constant 0 : i32
    %c0_i32_0 = arith.constant 0 : i32
    %c0_i32_1 = arith.constant 0 : i32
    return %c0_i32, %c0_i32_0 : i32, i32
  }
  func.func @transform_4(%arg0: i32) -> (i32, i32) {
    %c0_i32 = arith.constant 0 : i32
    %c0_i32_0 = arith.constant 0 : i32
    %c0_i32_1 = arith.constant 0 : i32
    return %c0_i32, %c0_i32_0 : i32, i32
  }
  func.func @transform_5(%arg0: i32) -> (i32, i32) {
    %c0_i32 = arith.constant 0 : i32
    %c0_i32_0 = arith.constant 0 : i32
    %c0_i32_1 = arith.constant 0 : i32
    return %c0_i32, %c0_i32_0 : i32, i32
  }
  func.func @transform_6(%arg0: i32) -> (i32, i32) {
    %c0_i32 = arith.constant 0 : i32
    %c0_i32_0 = arith.constant 0 : i32
    %c0_i32_1 = arith.constant 0 : i32
    return %c0_i32, %c0_i32_0 : i32, i32
  }
  func.func @transform_7(%arg0: i32) -> (i32, i32, i32) {
    %c0_i32 = arith.constant 0 : i32
    %c0_i32_0 = arith.constant 0 : i32
    %c0_i32_1 = arith.constant 0 : i32
    return %arg0, %c0_i32, %c0_i32_0 : i32, i32, i32
  }
  func.func @transform_8(%arg0: i32) -> (i32, i32, i32) {
    %c0_i32 = arith.constant 0 : i32
    %c0_i32_0 = arith.constant 0 : i32
    %c0_i32_1 = arith.constant 0 : i32
    return %arg0, %c0_i32, %c0_i32_0 : i32, i32, i32
  }
}

</mosaic_0001>

<bundles_post_ra>
// kernel: tpu_custom_call.1
= control target key start
LH: loop header
LB: loop body
LE: loop exit
PB: predicated region body
PF: predicated region fallthrough
CT: control target
= control target key end

     0   :  { %14 = vsyncpa [#allocation3], 0  ;;  %s1304_s0 = inlined_call_operand.hbm [shape: f32[2,32,256], index: 0, kind: input, shape index: {}]   ;;  %s1305_s1 = inlined_call_operand.hbm [shape: f32[32,32], index: 1, kind: input, shape index: {}]   ;;  %s1306_s2 = inlined_call_operand.vmem [shape: f32[1,32], index: 2, kind: input, shape index: {}]   ;;  %s1307_s3 = inlined_call_operand.vmem [shape: f32[1,32], index: 3, kind: input, shape index: {}]   ;;  %s1308_s4 = inlined_call_operand.vmem [shape: f32[1,32], index: 4, kind: input, shape index: {}]   ;;  %s1309_s5 = inlined_call_operand.vmem [shape: f32[1,32], index: 5, kind: input, shape index: {}]   ;;  %s1310_s6 = inlined_call_operand.vmem [shape: f32[1,32], index: 6, kind: input, shape index: {}]   ;;  %s1311_s7 = inlined_call_operand.hbm [shape: f32[2,32,256], index: 7, kind: output, shape index: {0}]   ;;  %s1312_s8 = inlined_call_operand.hbm [shape: f32[2,1,32], index: 8, kind: output, shape index: {1}]  }
   0x1   :  { %16 = vsyncpa [#allocation3 + $0x1], 0 }
   0x2   :  { %17 = vsyncpa [#allocation6], 0 }
   0x3   :  { %18 = vsyncpa [#allocation4], 0 }
   0x4   :  { %20 = vsyncpa [#allocation4 + $0x1], 0 }
   0x5   :  { %21 = vsyncpa [#allocation9], 0 }
   0x6   :  { %23 = vsyncpa [#allocation9 + $0x1], 0  ;;  %s1027_s27 = smov 0   ;;  %s1029_s28 = smov 0  }
   0x7   :  { %s1031_s29 = smov 0   ;;  %s1033_s30 = smov 0  }
   0x8 LB: > { %s1048_s9 = sadd.s32 4294967295, %s967_s30   ;;  %s685_s10 = sadd.s32 4294967294, %s967_s30   ;;  %s967_s30 = sphi %s1033_s30, %s1332_s30   ;;  %s963_s29 = sphi %s1031_s29, %s1335_s29   ;;  %s959_s28 = sphi %s1029_s28, %s1334_s28   ;;  %s955_s27 = sphi %s1027_s27, %s1333_s27  }
   0x9   : > { %p49_p0 = scmp.ne.s32.totalorder %s959_s28, %s955_s27  ;;  %p1313_p1 = scmp.eq.s32.totalorder %s1048_s9, 0 }
   0xa   : > { %p205_p3 = scmp.eq.s32.totalorder %s685_s10, 1  ;;  %p686_p5 = scmp.ge.s32.totalorder %s967_s30, 1 }
   0xb   : > { %p1057_p4 = por %p1313_p1, %p49_p0  ;;  %p238_p7 = scmp.lt.s32.totalorder %s967_s30, 3 }
   0xc   : > { %p1062_p6 = por %p205_p3, %p49_p0  ;;  %s969_s14 = smov [#allocation5]  }
   0xd   : > { %s1318_s11 = scalar_select %p1057_p4, 1, 0 }
   0xe   : > { %s1319_s12 = scalar_select %p1062_p6, 1, 0 }
   0xf   : > { %p1067_p8 = pnand %p686_p5, %p238_p7  ;;  %s250_s15 = sshll.u32 %s969_s14, 4  ;;  %s1071_s15 = int_to_ptr.vmem [resolvable:$true] %s250_s15 }
  0x10   : > { %s1083_s17 = sadd.s32 1, %s967_s30   ;;  %s36_s18 = sadd.s32 1, %s963_s29 }
  0x11   : > { %s1320_s13 = scalar_select %p1067_p8, 1, 0 }
  0x12   : > { %p738_p9 = pneg %p1067_p8  ;;  %1322 = sst [smem:[#allocation14_spill]] %s1083_s17 }
  0x13   : > { %s33_s19 = ssub.s32 %s967_s30, %s1083_s17  ;;  %s807_s22 = scalar_lea.hbm %s1305_s1, 512 }
  0x14   : > { %p1078_p11 = pnand %p738_p9, %p1313_p1  ;;  %p808_p12 = scmp.ne.s32.totalorder %s1305_s1, %s807_s22 }
  0x15   : > { %p814_p5 = scmp.lt.u32.totalorder %s807_s22, %s1305_s1 }
  0x16   : > { %p809_p13 = pneg %p1078_p11 }
  0x18   : > { %p810_p0 = pnand %p809_p13, %p808_p12 }
  0x1a   : > { %p811_p3 = pneg %p810_p0 }
  0x1c   : > { %p816_p7 = pnand %p814_p5, %p811_p3 }
  0x1e   : > { %819 = shalt.err (!%p816_p7)
}
  0x1f   : > { %s820_s10 = scalar_lea.vmem %s1071_s15, 512  ;;  %p828_p2 = scmp.lt.s32.totalorder %s1071_s15, %s1071_s15 }
  0x20   : > { %p821_p9 = scmp.ne.s32.totalorder %s1071_s15, %s820_s10  ;;  %p829_p6 = scmp.lt.s32.totalorder %s820_s10, %s820_s10 }
  0x22   : > { %p823_p10 = pnand %p821_p9, %p809_p13  ;;  %p830_p4 = por %p829_p6, %p828_p2 }
  0x24   : > { %p824_p1 = pneg %p823_p10 }
  0x26   : > { %p831_p8 = pnand %p830_p4, %p824_p1 }
  0x28   : > { %834 = shalt.err (!%p831_p8)
}
  0x29   : > { %s970_s14 = smov 128   ;;  %s971_s20 = smov 8  }
  0x2a   : > { %741 = dma.hbm_to_vmem [thread:$0]  (!%p1078_p11), %s1305_s1, 512, %s1071_s15, [#allocation6], %s970_s14, %s970_s14, %s971_s20  }
  0x2b   : > { %p34_p2 = scmp.eq.s32.totalorder %s33_s19, 0  ;;  %p43_p1 = scmp.ne.s32.totalorder %s963_s29, %s959_s28 }
  0x2c   : > { %p44_p4 = scmp.eq.s32.totalorder %s967_s30, 0  ;;  %p754_p6 = scmp.lt.s32.totalorder %s967_s30, 2 }
  0x2d   : > { %s1114_s23 = scalar_select %p34_p2, %s963_s29, %s36_s18  }
  0x2e   : > { %p45_p8 = por %p44_p4, %p43_p1  ;;  %p1323_p10 = scmp.eq.s32.totalorder %s1048_s9, 1 }
  0x2f   : > { %s279_s25 = sand.u32 1, %s963_s29   ;;  %s704_s26 = sshll.u32 %s967_s30, 10 }
  0x30   : > { %p1118_p12 = por %p1323_p10, %p43_p1  ;;  %s689_s10 = sshll.u32 %s279_s25, 6 }
  0x31   : > { %s1127_s21 = scalar_lea.hbm %s1304_s0, %s704_s26  ;;  %s283_s15 = scalar_lea.vmem [#allocation2], %s689_s10 }
  0x32   : > { %s290_s18 = sshll.u32 %s283_s15, 4  ;;  %p1129_p11 = pnand %p754_p6, %p45_p8  ;;  %s1133_s18 = int_to_ptr.vmem [resolvable:$true] %s290_s18 }
  0x33   : > { %s1135_s14 = scalar_lea.sflag [#allocation3], %s279_s25  ;;  %s835_s20 = scalar_lea.hbm %s1127_s21, 1024 }
  0x34   : > { %p836_p13 = scmp.ne.s32.totalorder %s1127_s21, %s835_s20  ;;  %p837_p0 = pneg %p1129_p11 }
  0x35   : > { %s840_s26 = scalar_lea.hbm %s1304_s0, 2048  ;;  %p841_p7 = scmp.lt.u32.totalorder %s1127_s21, %s1304_s0 }
  0x36   : > { %p838_p3 = pnand %p837_p0, %p836_p13  ;;  %p842_p9 = scmp.lt.u32.totalorder %s840_s26, %s835_s20 }
  0x37   : > { %p844_p1 = scmp.lt.u32.totalorder %s835_s20, %s1127_s21 }
  0x38   : > { %p839_p5 = pneg %p838_p3  ;;  %p843_p2 = por %p842_p9, %p841_p7 }
  0x3a   : > { %p845_p4 = por %p844_p1, %p843_p2 }
  0x3c   : > { %p846_p6 = pnand %p845_p4, %p839_p5 }
  0x3e   : > { %849 = shalt.err (!%p846_p6)
}
  0x3f   : > { %s850_s25 = scalar_lea.vmem %s1133_s18, 1024  ;;  %s972_s15 = smov [#allocation2]  }
  0x40   : > { %p851_p8 = scmp.ne.s32.totalorder %s1133_s18, %s850_s25  ;;  %s855_s17 = sshll.u32 %s972_s15, 4  ;;  %s856_s17 = int_to_ptr.vmem [resolvable:$false] %s855_s17 }
  0x41   : > { %s857_s22 = scalar_lea.vmem %s856_s17, 2048  ;;  %p858_p3 = scmp.lt.s32.totalorder %s1133_s18, %s856_s17 }
  0x42   : > { %p853_p10 = pnand %p851_p8, %p837_p0  ;;  %p859_p7 = scmp.lt.s32.totalorder %s857_s22, %s850_s25 }
  0x44   : > { %p854_p13 = pneg %p853_p10  ;;  %p860_p9 = por %p859_p7, %p858_p3 }
  0x46   : > { %p861_p2 = pnand %p860_p9, %p854_p13 }
  0x48   : > { %864 = shalt.err (!%p861_p2)
}
  0x49   : > { %s973_s20 = smov 256   ;;  %s974_s26 = smov 16  }
  0x4a   : > { %745 = dma.hbm_to_vmem [thread:$0]  (!%p1129_p11), %s1127_s21, 1024, %s1133_s18, %s1135_s14, %s973_s20, %s973_s20, %s974_s26  }
  0x4b   : > { %p1326_p0 = scmp.ne.s32.totalorder %s1320_s13, 0 }
  0x4c   : > { %s1166_s10 = sand.u32 (!%p1326_p0), 1, %s959_s28   ;;  %p1327_p5 = scmp.ne.s32.totalorder (!%p1326_p0), %s1318_s11, 0 }
  0x4d   : > { %302 = sbr.rel (%p1326_p0) target bundleno = 643 (0x283), region = 48  ;;  %s693_s16 = sshll.u32 (!%p1326_p0), %s1166_s10, 6 }
  0x4e   : > { %s305_s25 = scalar_lea.sflag (!%p1326_p0), [#allocation3], %s1166_s10  ;;  %s308_s15 = scalar_lea.vmem (!%p1326_p0), [#allocation2], %s693_s16 }
  0x54   : > { %938 = dma.done.wait (%p1327_p5), %s305_s25, 1024  }
  0x55   : > { %940 = vsyncadd (%p1327_p5), %s305_s25, 4294966272  ;;  %p1328_p11 = scmp.eq.s32.totalorder %s1048_s9, 0 }
  0x57   : > { %942 = dma.done.wait (%p1328_p11), [#allocation6], 512   ;;  %p1329_p1 = pmov %p1328_p11 }
  0x58   : > { %v1180_v0 = vld [vmem:[%s308_s15] sm:$0xff]  ;;  %v1182_v1 = vld [vmem:[%s308_s15 + $0x8] sm:$0xff]  ;;  %v1190_v5 = vld [vmem:[%s308_s15 + $0x10] sm:$0xff]  ;;  %v975_v15 = vmov 0.0|0.0   ;;  %vm976_vm0 = vmmov 0   ;;  %v977_v19 = vmov 0.0   ;;  %v382_v20 = vlaneseq }
  0x59   : > { %944 = vsyncadd (%p1329_p1), [#allocation6], 4294966784  ;;  %v1184_v2 = vld [vmem:[%s308_s15 + $0x20] sm:$0xff]  ;;  %v357_v3 = vadd.f32 %v1182_v1, %v1180_v0  ;;  %v1188_v4 = vld [vmem:[%s308_s15 + $0x28] sm:$0xff]  ;;  %722 = vmatprep.subr.bf16.mxu0 %v975_v15  ;;  %719 = vmatprep.mubr.msk.f32.mxu0 %vm976_vm0, %v977_v19  ;;  %vm393_vm1 = vcmask 130112   ;;  %vm400_vm2 = vcmask 195712  }
  0x5a   : > { %v1192_v6 = vld [vmem:[%s308_s15 + $0x18] sm:$0xff]  ;;  %v359_v7 = vadd.f32 %v1188_v4, %v1184_v2  ;;  %v1196_v8 = vld [vmem:[%s308_s15 + $0x30] sm:$0xff]  ;;  %v373_v12 = vld [vmem:[#allocation5] sm:$0xff]  ;;  %v383_v21 = vand.u32 127, %v382_v20  ;;  %v385_v22 = vshrl.u32 %v382_v20, 7  ;;  %vm407_vm3 = vcmask 261312  }
  0x5b   : > { %v1198_v9 = vld [vmem:[%s308_s15 + $0x38] sm:$0xff]  ;;  %361 = vadd.xlane.f32.xlu0 %v357_v3  ;;  %v358_v10 = vadd.f32 %v1192_v6, %v1190_v5  ;;  %v374_v13 = vld [vmem:[#allocation5 + $0x8] sm:$0xff]  ;;  %v375_v16 = vld [vmem:[#allocation5 + $0x10] sm:$0xff]  ;;  %vm409_vm4 = vcmask 261120   ;;  %vm506_vm7 = vcmask 253952   ;;  %s701_s25 = sshll.u32 %s1048_s9, 4 }
  0x5c   : > { %365 = vadd.xlane.f32.xlu1 %v359_v7  ;;  %v360_v11 = vadd.f32 %v1198_v9, %v1196_v8  ;;  %v723_v14 = vpack.c.bf16 %v374_v13, %v373_v12  ;;  %v376_v17 = vld [vmem:[#allocation5 + $0x18] sm:$0xff]  ;;  %v388_v23 = vadd.s32 4294967288, %v383_v21  ;;  %v395_v25 = vadd.s32 4294967280, %v383_v21  ;;  %v482_v45 = vld [vmem:[%s1310_s6] sm:$0x1]  ;;  %s348_s15 = scalar_lea.vmem [#allocation8], %s1166_s10  ;;  %s1224_s21 = scalar_lea.hbm %s1312_s8, %s701_s25 }
  0x5d   : > { %v726_v18 = vpack.c.bf16 %v376_v17, %v375_v16  ;;  %v402_v26 = vadd.s32 4294967272, %v383_v21  ;;  %v386_v28 = vsub.s32 %v383_v21, %v385_v22  ;;  %v483_v46 = vadd.f32 1e-05, %v482_v45  ;;  %v377_v52 = vld [vmem:[%s1306_s2] sm:$0x1]  ;;  %s577_s18 = sshll.u32 %s348_s15, 4  ;;  %s578_s18 = int_to_ptr.vmem [resolvable:$true] %s577_s18 }
  0x5e   : > { %724 = vmatpush3.bf16.msra.mxu0 %v723_v14  ;;  %v391_v30 = vsub.s32 %v388_v23, %v385_v22  ;;  %v398_v31 = vsub.s32 %v395_v25, %v385_v22  ;;  %v493_v54 = vld [vmem:[%s1309_s5] sm:$0x1]  ;;  %s549_s19 = scalar_lea.sflag [#allocation9], %s1166_s10  ;;  %s865_s14 = scalar_lea.vmem %s578_s18, 16 }
  0x5f   : > { %363 = vadd.xlane.f32.xlu0 %v358_v10  ;;  %725 = vmatprep.subr.bf16.mxu0 %v975_v15  ;;  %v405_v34 = vsub.s32 %v402_v26, %v385_v22  ;;  %799 = vrsqrt.f32 %v483_v46  ;;  %vm486_vm5 = vcmp.eq.f32.partialorder %v483_v46, inf  ;;  %v489_v49 = vand.u32 2147483648, %v483_v46  ;;  %v496_v59 = vld [vmem:[%s1307_s3] sm:$0x1]  ;;  %p866_p4 = scmp.ne.s32.totalorder %s578_s18, %s865_s14  ;;  %s978_s17 = smov [#allocation8]  }
  0x60   : > { %367 = vadd.xlane.f32.xlu1 %v360_v11  ;;  %vm488_vm6 = vcmp.eq.f32.partialorder %v483_v46, 0.0  ;;  %v498_v61 = vld [vmem:[%s1308_s4] sm:$0x1]  ;;  %v510_v11 = vsub.s32 0, %v385_v22  ;;  %s869_s22 = sshll.u32 %s978_s17, 4  ;;  %s870_s22 = int_to_ptr.vmem [resolvable:$false] %s869_s22 }
  0x61   : > { %p867_p6 = pnand %p866_p4, %p1118_p12  ;;  %s871_s20 = scalar_lea.vmem %s870_s22, 32 }
  0x62   : > { %727 = vmatpush3.bf16.msra.mxu0 %v726_v18  ;;  %p872_p10 = scmp.lt.s32.totalorder %s578_s18, %s870_s22  ;;  %p873_p13 = scmp.lt.s32.totalorder %s871_s20, %s865_s14 }
  0x63   : > { %p868_p8 = pneg %p867_p6 }
  0x64   : > { %p874_p3 = por %p873_p13, %p872_p10 }
  0x66   : > { %p875_p7 = pnand %p874_p3, %p868_p8 }
  0x69   : > { %v800_v47 = vpop.eup %799 }
  0x6a   : > { %v485_v48 = vmul.f32 %v800_v47, %v483_v46 }
  0x6c   : > { %v487_v50 = vsel %vm486_vm5, %v483_v46, %v485_v48 }
  0x6d   : > { %v490_v51 = vsel %vm488_vm6, %v489_v49, %v487_v50 }
  0x6e   : > { %801 = vrcp.f32 %v490_v51 }
  0x78   : > { %v802_v57 = vpop.eup %801 }
  0xe8   : > { %v362_v24 = vpop.xlane.xlu0 %361 }
  0xe9   : > { %v366_v27 = vpop.xlane.xlu1 %365  ;;  %v369_v29 = vmul.f32 0.00390625, %v362_v24 }
  0xea   : > { %v371_v32 = vmul.f32 0.00390625, %v366_v27 }
  0xeb   : > { %v387_v38 = vrot.slane %v369_v29, %v386_v28 }
  0xec   : > { %v364_v33 = vpop.xlane.xlu0 %363  ;;  %v399_v40 = vrot.slane %v371_v32, %v398_v31 }
  0xed   : > { %v370_v35 = vmul.f32 0.00390625, %v364_v33  ;;  %v368_v36 = vpop.xlane.xlu1 %367 }
  0xee   : > { %v372_v37 = vmul.f32 0.00390625, %v368_v36 }
  0xef   : > { %v392_v39 = vrot.slane %v370_v35, %v391_v30 }
  0xf0   : > { %v406_v41 = vrot.slane %v372_v37, %v405_v34 }
  0xf1   : > { %v394_v42 = vsel %vm393_vm1, %v392_v39, %v387_v38 }
  0xf2   : > { %v401_v43 = vsel %vm400_vm2, %v399_v40, %v394_v42 }
  0xf3   : > { %v408_v44 = vsel %vm407_vm3, %v406_v41, %v401_v43 }
  0xf4   : > { %720 = vmatmul.mubr.msk.f32.vlgmr.msra.gmra.mrb[0].mxu0 %vm409_vm4, %v408_v44 }
 0x1c7   : > { %v478_v53 = vpop.f32.mrb[0].mxu0 }
 0x1c8   : > { %v479_v55 = vadd.f32 %v478_v53, %v377_v52  ;;  %v721_v56 = vpop.f32.mrb[1].mxu0 }
 0x1ca   : > { %v494_v58 = vsub.f32 %v479_v55, %v493_v54 }
 0x1cc   : > { %v495_v60 = vmul.f32 %v802_v57, %v494_v58 }
 0x1ce   : > { %v497_v62 = vmul.f32 %v496_v59, %v495_v60 }
 0x1d0   : > { %v499_v63 = vadd.f32 %v498_v61, %v497_v62 }
 0x1d2   : > { %v697_v3 = vmul.f32 -1.442695, %v499_v63 }
 0x1d4   : > { %803 = vpow2.f32 %v697_v3 }
 0x1de   : > { %v804_v7 = vpop.eup %803 }
 0x1df   : > { %v503_v10 = vadd.f32 1.0, %v804_v7 }
 0x1e1   : > { %805 = vrcp.f32 %v503_v10 }
 0x1eb   : > { %v806_v12 = vpop.eup %805 }
 0x1ec   : > { %v511_v13 = vrot.slane %v806_v12, %v510_v11  ;;  %507 = vst.msk [vmem:[%s348_s15] sm:$0x1] %vm506_vm7, %v806_v12 }
 0x1ee   : > { %517 = vbcast.lane.b32.xlu1 %v511_v13, 264  ;;  %513 = vbcast.lane.b32.xlu0 %v511_v13, 256 }
 0x1ef   : > { %878 = shalt.err (!%p875_p7)
}
 0x1f0   : > { %s879_s26 = scalar_lea.hbm %s1224_s21, 16  ;;  %s883_s11 = scalar_lea.hbm %s1312_s8, 32 }
 0x1f1   : > { %p880_p9 = scmp.ne.s32.totalorder %s1224_s21, %s879_s26  ;;  %p884_p5 = scmp.lt.u32.totalorder %s1224_s21, %s1312_s8 }
 0x1f2   : > { %p885_p11 = scmp.lt.u32.totalorder %s883_s11, %s879_s26  ;;  %p887_p4 = scmp.lt.u32.totalorder %s879_s26, %s1224_s21 }
 0x1f3   : > { %p881_p2 = pnand %p880_p9, %p1118_p12 }
 0x1f4   : > { %p886_p1 = por %p885_p11, %p884_p5 }
 0x1f5   : > { %p882_p0 = pneg %p881_p2 }
 0x1f6   : > { %p888_p6 = por %p887_p4, %p886_p1 }
 0x1f8   : > { %p889_p8 = pnand %p888_p6, %p882_p0 }
 0x1fa   : > { %892 = shalt.err (!%p889_p8)
}
 0x1fb   : > { %735 = dma.vmem_to_hbm [thread:$0]  (%p1118_p12), %s578_s18, 16, %s1224_s21, %s549_s19   ;;  %521 = vbcast.lane.b32.xlu1 %v511_v13, 272 }
 0x1fc   : > { %s342_s14 = scalar_lea.vmem [#allocation7], %s693_s16  ;;  %s705_s18 = sshll.u32 %s1048_s9, 10 }
 0x1fd   : > { %s561_s21 = sshll.u32 %s342_s14, 4  ;;  %s1258_s22 = scalar_lea.hbm %s1311_s7, %s705_s18  ;;  %s1253_s21 = int_to_ptr.vmem [resolvable:$true] %s561_s21 }
 0x1fe   : > { %s544_s9 = scalar_lea.sflag [#allocation4], %s1166_s10  ;;  %s893_s20 = scalar_lea.vmem %s1253_s21, 1024 }
 0x1ff   : > { %525 = vbcast.lane.b32.xlu1 %v511_v13, 280  ;;  %p894_p10 = scmp.ne.s32.totalorder %s1253_s21, %s893_s20  ;;  %s979_s26 = smov [#allocation7]  }
 0x200   : > { %s897_s25 = sshll.u32 %s979_s26, 4  ;;  %s898_s25 = int_to_ptr.vmem [resolvable:$false] %s897_s25 }
 0x201   : > { %p895_p13 = pnand %p894_p10, %p1118_p12  ;;  %s899_s15 = scalar_lea.vmem %s898_s25, 2048 }
 0x202   : > { %p900_p7 = scmp.lt.s32.totalorder %s1253_s21, %s898_s25  ;;  %p901_p9 = scmp.lt.s32.totalorder %s899_s15, %s893_s20 }
 0x203   : > { %p896_p3 = pneg %p895_p13 }
 0x204   : > { %p902_p2 = por %p901_p9, %p900_p7 }
 0x206   : > { %p903_p0 = pnand %p902_p2, %p896_p3 }
 0x260   : > { %v518_v14 = vpop.permute.xlu1 %517  ;;  %v514_v15 = vpop.permute.xlu0 %513 }
 0x261   : > { %v529_v16 = vmul.f32 %v518_v14, %v1190_v5  ;;  %v530_v17 = vmul.f32 %v518_v14, %v1192_v6  ;;  %v527_v18 = vmul.f32 %v514_v15, %v1180_v0  ;;  %v528_v19 = vmul.f32 %v514_v15, %v1182_v1 }
 0x263   : > { %537 = vst [vmem:[%s342_s14 + $0x10] sm:$0xff] %v529_v16  ;;  %538 = vst [vmem:[%s342_s14 + $0x18] sm:$0xff] %v530_v17 }
 0x264   : > { %535 = vst [vmem:[%s342_s14] sm:$0xff] %v527_v18  ;;  %536 = vst [vmem:[%s342_s14 + $0x8] sm:$0xff] %v528_v19 }
 0x26d   : > { %v522_v20 = vpop.permute.xlu1 %521 }
 0x26e   : > { %v531_v21 = vmul.f32 %v522_v20, %v1184_v2  ;;  %v532_v5 = vmul.f32 %v522_v20, %v1188_v4 }
 0x270   : > { %539 = vst [vmem:[%s342_s14 + $0x20] sm:$0xff] %v531_v21  ;;  %540 = vst [vmem:[%s342_s14 + $0x28] sm:$0xff] %v532_v5 }
 0x271   : > { %v526_v0 = vpop.permute.xlu1 %525 }
 0x272   : > { %v533_v1 = vmul.f32 %v526_v0, %v1196_v8  ;;  %v534_v2 = vmul.f32 %v526_v0, %v1198_v9 }
 0x274   : > { %541 = vst [vmem:[%s342_s14 + $0x30] sm:$0xff] %v533_v1  ;;  %542 = vst [vmem:[%s342_s14 + $0x38] sm:$0xff] %v534_v2 }
 0x275   : > { %906 = shalt.err (!%p903_p0)
}
 0x276   : > { %s907_s11 = scalar_lea.hbm %s1258_s22, 1024  ;;  %s911_s14 = scalar_lea.hbm %s1311_s7, 2048 }
 0x277   : > { %p908_p5 = scmp.ne.s32.totalorder %s1258_s22, %s907_s11  ;;  %p912_p4 = scmp.lt.u32.totalorder %s1258_s22, %s1311_s7 }
 0x278   : > { %p913_p6 = scmp.lt.u32.totalorder %s911_s14, %s907_s11  ;;  %p915_p10 = scmp.lt.u32.totalorder %s907_s11, %s1258_s22 }
 0x279   : > { %p909_p11 = pnand %p908_p5, %p1118_p12 }
 0x27a   : > { %p914_p8 = por %p913_p6, %p912_p4 }
 0x27b   : > { %p910_p1 = pneg %p909_p11 }
 0x27c   : > { %p916_p13 = por %p915_p10, %p914_p8 }
 0x27e   : > { %p917_p3 = pnand %p916_p13, %p910_p1 }
 0x280   : > { %920 = shalt.err (!%p917_p3)
}
 0x281   : > { %s980_s19 = smov 256   ;;  %s981_s20 = smov 16  }
 0x282   : > { %734 = dma.vmem_to_hbm [thread:$0]  (%p1118_p12), %s1253_s21, 1024, %s1258_s22, %s544_s9, %s980_s19, %s980_s19, %s981_s20  }
 0x283 PF: > { %s589_s26 = sand.u32 1, %s955_s27   ;;  %p1330_p7 = scmp.ne.s32.totalorder %s1319_s12, 0 }
 0x284   : > { %p1331_p9 = scmp.ge.s32.totalorder %s967_s30, 2  ;;  %s590_s25 = scalar_lea.sflag [#allocation4], %s589_s26 }
 0x286   : > { %p747_p2 = pnand %p1331_p9, %p1330_p7 }
 0x288   : > { %946 = dma.done.wait (!%p747_p2), %s590_s25, 1024  }
 0x289   : > { %948 = vsyncadd (!%p747_p2), %s590_s25, 4294966272  ;;  %s599_s15 = scalar_lea.sflag [#allocation9], %s589_s26 }
 0x28a   : > { %950 = dma.done.wait (!%p747_p2), %s599_s15, 16  }
 0x28b   : > { %952 = vsyncadd (!%p747_p2), %s599_s15, 4294967280  ;;  %s1332_s30 = sld [smem:[#allocation14_spill]]  ;;  %s1333_s27 = smov %s959_s28 }
 0x28c   : > { %s1334_s28 = smov %s963_s29  ;;  %s1335_s29 = smov %s1114_s23 }
 0x291   : > { %p26_p12 = scmp.ge.s32.totalorder %s1332_s30, 4  }
 0x293   :  { %28 = sbr.rel (!%p26_p12) target bundleno = 8 (0x8), region = 114 }
 0x29a   :  { %603 = vsyncpa [#allocation3], 1 }
 0x29b   :  { %605 = vsyncpa [#allocation3 + $0x1], 1 }
 0x29c   :  { %606 = vsyncpa [#allocation6], 1 }
 0x29d   :  { %607 = vsyncpa [#allocation4], 1 }
 0x29e   :  { %609 = vsyncpa [#allocation4 + $0x1], 1 }
 0x29f   :  { %610 = vsyncpa [#allocation9], 1 }
 0x2a0   :  { %612 = vsyncpa [#allocation9 + $0x1], 1 }

</bundles_post_ra>
